<compile_context>
chip_gen: v5e
topology: v5e:2x2
jax: 0.10.0
libtpu: 0.0.40
codegen_flags: <defaults>
</compile_context>

<pallas_src>
import functools

import jax
import jax.numpy as jnp
from jax.experimental import pallas as pl
from jax.experimental.pallas import tpu as pltpu

_MiB = 1024 * 1024
_REDUCE_CHUNK = 512  # lanes per slab for the chunked sum-of-squares path


# --------------------------------------------------------------------------
# Kernels
# --------------------------------------------------------------------------
def _rmsnorm_noscale_kernel(x_ref, o_ref, *, epsilon, f32_multiply):
    """Whole-tile path: one f32 upcast of the (block_rows, H) tile."""
    x = x_ref[...]
    xf = x.astype(jnp.float32)
    var = jnp.mean(xf * xf, axis=-1, keepdims=True)
    inv = jax.lax.rsqrt(var + epsilon)
    if f32_multiply or o_ref.dtype == jnp.float32:
        o_ref[...] = (xf * inv).astype(o_ref.dtype)
    else:
        # Narrow-dtype final multiply (bf16 VALU on v6e/v7x halves vreg width).
        o_ref[...] = (x * inv.astype(x.dtype)).astype(o_ref.dtype)


def _rmsnorm_noscale_kernel_chunked(x_ref, o_ref, *, epsilon, chunk,
                                    f32_multiply):
    """Chunked path (sub-32-bit dtype, H % chunk == 0).

    Both the sum-of-squares reduction and the normalize/store walk H in
    `chunk`-lane slabs, so a full (block_rows, H) f32 temporary is never
    materialized.  This matters most on v7x's 64 MiB VMEM: it lets the tile
    budget go entirely to the double-buffered I/O buffers.
    NOTE: strictly per-row math; padded rows in a ragged last block compute
    garbage that Pallas discards on writeback.  Do not add cross-row ops.
    """
    rows, H = x_ref.shape
    n_chunks = H // chunk

    def body(c, sumsq):
        start = pl.multiple_of(c * chunk, chunk)
        xs = x_ref[:, pl.ds(start, chunk)].astype(jnp.float32)
        return sumsq + jnp.sum(xs * xs, axis=-1, keepdims=True)

    sumsq = jax.lax.fori_loop(0, n_chunks, body,
                              jnp.zeros((rows, 1), jnp.float32))
    inv = jax.lax.rsqrt(sumsq / jnp.float32(H) + epsilon)
    inv_n = inv.astype(x_ref.dtype)

    @pl.loop(0, n_chunks)
    def _(c):
        start = pl.multiple_of(c * chunk, chunk)
        xs = x_ref[:, pl.ds(start, chunk)]
        if f32_multiply:
            o_ref[:, pl.ds(start, chunk)] = (
                xs.astype(jnp.float32) * inv).astype(o_ref.dtype)
        else:
            o_ref[:, pl.ds(start, chunk)] = (xs * inv_n).astype(o_ref.dtype)


# --------------------------------------------------------------------------
# Sizing helpers
# --------------------------------------------------------------------------
def _sublane_multiple(dtype):
    itemsize = jnp.dtype(dtype).itemsize
    if itemsize >= 4:
        return 8
    if itemsize == 2:
        return 16
    return 32


def _round_up(x, m):
    return ((x + m - 1) // m) * m


def _tpu_vmem_and_cores():
    """(vmem_capacity_bytes, tensorcores_per_chip, is_v5e) with safe fallbacks."""
    vmem_cap = None
    try:
        vmem_cap = int(pltpu.get_tpu_info().vmem_capacity_bytes)
    except Exception:
        vmem_cap = None
    kind = ""
    try:
        kind = jax.devices()[0].device_kind.lower()
    except Exception:
        kind = ""
    if vmem_cap is None or vmem_cap <= 0:
        # v7x: 64 MiB / TensorCore; v5e/v6e: 128 MiB.  Unknown -> conservative.
        vmem_cap = 64 * _MiB if ("v7" in kind or not kind) else 128 * _MiB
    # v7x has 2 TensorCores per chip (megacore); v5e/v6e have 1.
    num_tc = 2 if ("v7" in kind or vmem_cap <= 64 * _MiB) else 1
    is_v5e = ("v5e" in kind) or ("v5 lite" in kind) or ("v5litepod" in kind)
    return vmem_cap, num_tc, is_v5e


def _per_row_bytes(H, itemsize, chunked):
    if chunked:
        # Double-buffered in+out in native dtype; only slab-sized f32 temps.
        return H * 4 * itemsize + 12 * _REDUCE_CHUNK
    # Double-buffered in+out plus ~two full-tile f32 temporaries (upcast /
    # product) used by the whole-tile kernel.
    return H * (4 * itemsize + 2 * 4)


def _pick_block_rows(R, H, dtype, chunked, vmem_cap, num_tc):
    """Largest sublane-aligned row block that fits ~half of physical VMEM."""
    sub = _sublane_multiple(dtype)
    itemsize = jnp.dtype(dtype).itemsize
    per_row = _per_row_bytes(H, itemsize, chunked)
    budget = vmem_cap // 2  # generation-aware tile budget
    br = max(sub, budget // per_row)
    br = min(br, 8192)  # bytes-driven sizing; generous row ceiling for tiny H
    # Minimum grid steps when R allows it: 4 on v7x (>=2 blocks per TC),
    # 2 on single-TC chips (enough for double-buffered DMA overlap).
    min_steps = 4 if num_tc == 2 else 2
    br = min(br, max(sub, _round_up(pl.cdiv(R, min_steps), sub)))
    br = min(br, _round_up(max(R, 1), sub))
    br = max(sub, (br // sub) * sub)
    # v7x: best-effort even step count so the "parallel" axis splits evenly
    # across the two TensorCores.
    if num_tc == 2:
        steps = pl.cdiv(R, br)
        if steps > 1 and steps % 2 == 1:
            cand = max(sub, _round_up(pl.cdiv(R, steps + 1), sub))
            if cand <= br and pl.cdiv(R, cand) % 2 == 0:
                br = cand
    return br


# --------------------------------------------------------------------------
# Wrapper
# --------------------------------------------------------------------------
def rmsnorm_noscale(inputs, epsilon=1e-6, block_rows=None):
    """RMSNorm without scale over the last axis of `inputs` (dim=-1)."""
    orig_shape = inputs.shape
    H = orig_shape[-1]
    x2d = inputs.reshape(-1, H)  # free metadata reshape (row-major contiguous)
    R = x2d.shape[0]
    itemsize = jnp.dtype(inputs.dtype).itemsize

    vmem_cap, num_tc, is_v5e = _tpu_vmem_and_cores()

    chunked = (itemsize < 4 and H % _REDUCE_CHUNK == 0
               and H >= 2 * _REDUCE_CHUNK)
    # v5e's VPU has no native bf16 lanes: the narrow multiply saves nothing
    # there, so keep the final multiply in f32 (also matches reference
    # single-rounding numerics).  f32 inputs always use the f32 multiply.
    f32_multiply = is_v5e or itemsize >= 4

    if block_rows is None:
        block_rows = _pick_block_rows(R, H, inputs.dtype, chunked,
                                      vmem_cap, num_tc)

    # TODO(synk): if H is so large that a single (sublane, H) f32 slab cannot
    # fit VMEM, split the reduction over an "arbitrary" H-chunk grid axis with
    # an f32 accumulator scratch; not needed for transformer hidden sizes.

    grid = (pl.cdiv(R, block_rows),)  # ragged last block is masked by Pallas

    if chunked:
        kernel = functools.partial(_rmsnorm_noscale_kernel_chunked,
                                   epsilon=epsilon, chunk=_REDUCE_CHUNK,
                                   f32_multiply=f32_multiply)
    else:
        kernel = functools.partial(_rmsnorm_noscale_kernel, epsilon=epsilon,
                                   f32_multiply=f32_multiply)

    # VMEM limit derived from the actual footprint (+ margin for compiler
    # internal scratch), capped well below physical capacity.
    footprint = block_rows * _per_row_bytes(H, itemsize, chunked)
    vmem_limit = int(min(int(vmem_cap * 0.85),
                         max(32 * _MiB, footprint + 12 * _MiB)))

    out = pl.pallas_call(
        kernel,
        out_shape=jax.ShapeDtypeStruct((R, H), inputs.dtype),
        grid_spec=pltpu.PrefetchScalarGridSpec(
            num_scalar_prefetch=0,
            grid=grid,
            in_specs=[pl.BlockSpec((block_rows, H), lambda i: (i, 0))],
            out_specs=pl.BlockSpec((block_rows, H), lambda i: (i, 0)),
        ),
        compiler_params=pltpu.CompilerParams(
            dimension_semantics=("parallel",),
            vmem_limit_bytes=vmem_limit,
        ),
        cost_estimate=pl.CostEstimate(
            flops=3 * R * H,
            transcendentals=R,
            bytes_accessed=2 * R * H * itemsize,
        ),
    )(x2d)

    return out.reshape(orig_shape)


def rmsnorm_noscale_ref(inputs, epsilon=1e-6):
    x = inputs.astype(jnp.float32)
    var = jnp.mean(x * x, axis=-1, keepdims=True)
    return (x * jax.lax.rsqrt(var + epsilon)).astype(inputs.dtype)


if __name__ == "__main__":
    key = jax.random.PRNGKey(0)
    k0, k1, k2, k3 = jax.random.split(key, 4)

    # Primary small check (matches the module's (batch, seq, hidden) usage).
    B, S, H = 2, 8, 32
    x = jax.random.normal(k0, (B, S, H), dtype=jnp.float32)
    out = jax.block_until_ready(rmsnorm_noscale(x))
    ref = rmsnorm_noscale_ref(x)
    assert out.shape == x.shape and out.dtype == x.dtype
    assert jnp.allclose(out, ref, atol=1e-5, rtol=1e-5), "f32 mismatch"

    # Ragged row count exercises the cdiv grid (masked last block, no pad).
    x_ragged = jax.random.normal(k1, (3, 5, 32), dtype=jnp.float32)
    out_r = jax.block_until_ready(rmsnorm_noscale(x_ragged))
    ref_r = rmsnorm_noscale_ref(x_ragged)
    assert jnp.allclose(out_r, ref_r, atol=1e-5, rtol=1e-5), "ragged mismatch"

    # bf16, small H -> whole-tile path (narrow multiply on v6e/v7x, f32 on v5e).
    x_bf16 = jax.random.normal(k2, (2, 8, 128), dtype=jnp.bfloat16)
    out_b = jax.block_until_ready(rmsnorm_noscale(x_bf16))
    ref_b = rmsnorm_noscale_ref(x_bf16)
    assert out_b.dtype == jnp.bfloat16
    assert jnp.allclose(out_b.astype(jnp.float32), ref_b.astype(jnp.float32),
                        atol=2e-2, rtol=2e-2), "bf16 mismatch"

    # bf16 with H multiple of 512 -> chunked reduction / store path.
    x_chunk = jax.random.normal(k3, (2, 8, 1024), dtype=jnp.bfloat16)
    out_c = jax.block_until_ready(rmsnorm_noscale(x_chunk))
    ref_c = rmsnorm_noscale_ref(x_chunk)
    assert jnp.allclose(out_c.astype(jnp.float32), ref_c.astype(jnp.float32),
                        atol=2e-2, rtol=2e-2), "chunked bf16 mismatch"

    print("KERNEL_OK")
</pallas_src>

<mosaic_0001>
module attributes {stable_mosaic.version = 11 : i64} {
  func.func @_rmsnorm_noscale_kernel(%arg0: i32, %arg1: memref<8x32xf32, #tpu.memory_space<vmem>>, %arg2: memref<8x32xf32, #tpu.memory_space<vmem>>) attributes {dimension_semantics = [#tpu.dimension_semantics<parallel>], iteration_bounds = array<i64: 2>, scalar_prefetch = 0 : i64, scratch_operands = 0 : i64, tpu.core_type = #tpu.core_type<tc>, window_params = [{transform_indices = @transform_0, window_bounds = array<i64: 8, 32>}, {transform_indices = @transform_1, window_bounds = array<i64: 8, 32>}]} {
    %c0 = arith.constant 0 : index
    %c0_0 = arith.constant 0 : index
    %0 = vector.load %arg1[%c0, %c0_0] : memref<8x32xf32, #tpu.memory_space<vmem>>, vector<8x32xf32>
    %1 = arith.mulf %0, %0 : vector<8x32xf32>
    %cst = arith.constant dense<0.000000e+00> : vector<8xf32>
    %2 = vector.multi_reduction <add>, %1, %cst [1] : vector<8x32xf32> to vector<8xf32>
    %3 = vector.shape_cast %2 : vector<8xf32> to vector<8x1xf32>
    %cst_1 = arith.constant 3.200000e+01 : f32
    %4 = vector.broadcast %cst_1 : f32 to vector<8x1xf32>
    %5 = arith.divf %3, %4 : vector<8x1xf32>
    %cst_2 = arith.constant 9.99999997E-7 : f32
    %6 = vector.broadcast %cst_2 : f32 to vector<8x1xf32>
    %7 = arith.addf %5, %6 : vector<8x1xf32>
    %8 = math.rsqrt %7 : vector<8x1xf32>
    %9 = vector.broadcast %8 : vector<8x1xf32> to vector<8x32xf32>
    %10 = arith.mulf %0, %9 : vector<8x32xf32>
    %c0_3 = arith.constant 0 : index
    %c0_4 = arith.constant 0 : index
    %11 = vector.load %arg2[%c0_3, %c0_4] : memref<8x32xf32, #tpu.memory_space<vmem>>, vector<8x32xf32>
    tpu.vector_store %arg2[%c0_3, %c0_4], %10 {strides = array<i32>} : memref<8x32xf32, #tpu.memory_space<vmem>>, vector<8x32xf32>,
    return
  }
  func.func @transform_0(%arg0: i32) -> (i32, i32) {
    %c0_i32 = arith.constant 0 : i32
    %c0_i32_0 = arith.constant 0 : i32
    return %arg0, %c0_i32 : i32, i32
  }
  func.func @transform_1(%arg0: i32) -> (i32, i32) {
    %c0_i32 = arith.constant 0 : i32
    %c0_i32_0 = arith.constant 0 : i32
    return %arg0, %c0_i32 : i32, i32
  }
}

</mosaic_0001>

<bundles_post_ra>
// kernel: tpu_custom_call.1
= control target key start
LH: loop header
LB: loop body
LE: loop exit
PB: predicated region body
PF: predicated region fallthrough
CT: control target
= control target key end

     0   :  { %6 = vsyncpa [#allocation3], 0  ;;  %s552_s0 = inlined_call_operand.hbm [shape: f32[16,32], index: 0, kind: input, shape index: {}]   ;;  %s553_s1 = inlined_call_operand.hbm [shape: f32[16,32], index: 1, kind: output, shape index: {}]  }
   0x1   :  { %8 = vsyncpa [#allocation3 + $0x1], 0 }
   0x2   :  { %9 = vsyncpa [#allocation4], 0 }
   0x3   :  { %11 = vsyncpa [#allocation4 + $0x1], 0  ;;  %s419_s6 = smov 0   ;;  %s421_s7 = smov 0  }
   0x4   :  { %s423_s8 = smov 0   ;;  %s425_s9 = smov 0  }
   0x5 LB: > { %s440_s10 = sadd.s32 4294967295, %s406_s9   ;;  %s247_s11 = sadd.s32 4294967294, %s406_s9   ;;  %s406_s9 = sphi %s425_s9, %s563_s9   ;;  %s402_s8 = sphi %s423_s8, %s562_s8   ;;  %s398_s7 = sphi %s421_s7, %s561_s7   ;;  %s394_s6 = sphi %s419_s6, %s560_s6  }
   0x6   : > { %s444_s12 = sadd.s32 1, %s406_s9   ;;  %s24_s13 = sadd.s32 1, %s402_s8 }
   0x7   : > { %s21_s14 = ssub.s32 %s406_s9, %s444_s12  ;;  %p31_p0 = scmp.ne.s32.totalorder %s402_s8, %s398_s7 }
   0x8   : > { %p22_p1 = scmp.eq.s32.totalorder %s21_s14, 0  ;;  %p32_p2 = scmp.eq.s32.totalorder %s406_s9, 0 }
   0x9   : > { %p37_p3 = scmp.ne.s32.totalorder %s398_s7, %s394_s6  ;;  %p38_p4 = scmp.eq.s32.totalorder %s440_s10, 0 }
   0xa   : > { %s456_s15 = scalar_select %p22_p1, %s402_s8, %s24_s13  }
   0xb   : > { %p458_p5 = por %p32_p2, %p31_p0  ;;  %p462_p6 = por %p38_p4, %p37_p3 }
   0xc   : > { %p61_p7 = scmp.eq.s32.totalorder %s440_s10, 1  ;;  %p67_p8 = scmp.eq.s32.totalorder %s247_s11, 1 }
   0xd   : > { %p271_p10 = scmp.lt.s32.totalorder %s406_s9, 2  ;;  %s87_s20 = sand.u32 1, %s402_s8  }
   0xe   : > { %p469_p11 = por %p61_p7, %p31_p0  ;;  %p473_p12 = por %p67_p8, %p37_p3 }
   0xf   : > { %s251_s21 = sshll.u32 %s406_s9, 3  ;;  %s250_s22 = sshll.u32 %s87_s20, 3 }
  0x10   : > { %s95_s25 = scalar_lea.hbm %s552_s0, %s251_s21  ;;  %s91_s27 = scalar_lea.vmem [#allocation2], %s250_s22 }
  0x11   : > { %s97_s26 = sshll.u32 %s95_s25, 4  ;;  %s99_s28 = sshll.u32 %s91_s27, 4  ;;  %s98_s26 = int_to_ptr.hbm [resolvable:$true] %s97_s26  ;;  %s100_s28 = int_to_ptr.vmem [resolvable:$true] %s99_s28 }
  0x12   : > { %p484_p13 = pnand %p271_p10, %p458_p5  ;;  %p252_p0 = scmp.ge.s32.totalorder %s406_s9, 1 }
  0x13   : > { %p104_p1 = scmp.lt.s32.totalorder %s406_s9, 3  ;;  %s88_s30 = scalar_lea.sflag [#allocation3], %s87_s20 }
  0x14   : > { %s310_s2 = sshra.s32 %s98_s26, 4  ;;  %p314_p3 = pneg %p484_p13  ;;  %s311_s2 = int_to_ptr.hbm [resolvable:$true] %s310_s2 }
  0x15   : > { %s312_s3 = scalar_lea.hbm %s311_s2, 8  ;;  %s317_s11 = scalar_lea.hbm %s552_s0, 16 }
  0x16   : > { %p313_p2 = scmp.ne.s32.totalorder %s311_s2, %s312_s3  ;;  %p318_p5 = scmp.lt.s32.totalorder %s311_s2, %s552_s0 }
  0x17   : > { %p319_p8 = scmp.lt.s32.totalorder %s317_s11, %s312_s3 }
  0x18   : > { %p315_p4 = pnand %p314_p3, %p313_p2 }
  0x19   : > { %p320_p10 = por %p319_p8, %p318_p5 }
  0x1a   : > { %p316_p7 = pneg %p315_p4 }
  0x1c   : > { %p321_p9 = pnand %p320_p10, %p316_p7 }
  0x1e   : > { %324 = shalt.err (!%p321_p9)
}
  0x1f   : > { %266 = dma.hbm_to_vmem [thread:$0]  (!%p484_p13), %s98_s26, 128, %s100_s28, %s88_s30  }
  0x20   : > { %p105_p2 = pnand %p252_p0, %p104_p1 }
  0x21   : > { %s505_s16 = sand.u32 (!%p105_p2), 1, %s398_s7  }
  0x22   : > { %108 = sbr.rel (%p105_p2) target bundleno = 187 (0xbb), region = 24  ;;  %s253_s20 = sshll.u32 (!%p105_p2), %s505_s16, 3 }
  0x23   : > { %s111_s21 = scalar_lea.sflag (!%p105_p2), [#allocation3], %s505_s16  ;;  %s114_s22 = scalar_lea.vmem (!%p105_p2), [#allocation2], %s253_s20 }
  0x27   : > { %385 = dma.done.wait (%p462_p6), %s111_s21, 128  }
  0x28   : > { %387 = vsyncadd (%p462_p6), %s111_s21, 4294967168  ;;  %v134_v0 = vld [vmem:[%s114_s22] sm:$0xff]  ;;  %vm136_vm0 = vcmask 261120   ;;  %v408_v3 = vmov 32.0   ;;  %s256_s17 = sshll.u32 %s440_s10, 3  ;;  %s133_s26 = scalar_lea.vmem [#allocation5], %s253_s20 }
  0x29   : > { %v135_v1 = vmul.f32 %v134_v0, %v134_v0  ;;  %306 = vrcp.f32 %v408_v3  ;;  %s172_s25 = scalar_lea.hbm %s553_s1, %s256_s17  ;;  %s174_s27 = sshll.u32 %s133_s26, 4  ;;  %s175_s27 = int_to_ptr.vmem [resolvable:$true] %s174_s27 }
  0x2a   : > { %s176_s28 = sshll.u32 %s172_s25, 4  ;;  %s162_s10 = scalar_lea.sflag [#allocation4], %s505_s16  ;;  %s177_s28 = int_to_ptr.hbm [resolvable:$true] %s176_s28 }
  0x2b   : > { %v137_v2 = vsel %vm136_vm0, %v135_v1, 0.0  ;;  %s354_s29 = sshra.s32 %s177_s28, 4  ;;  %s360_s4 = scalar_lea.hbm %s553_s1, 16  ;;  %s355_s29 = int_to_ptr.hbm [resolvable:$true] %s354_s29 }
  0x2c   : > { %138 = vadd.xlane.f32.xlu0 %v137_v2  ;;  %s356_s30 = scalar_lea.hbm %s355_s29, 8  ;;  %p361_p0 = scmp.lt.s32.totalorder %s355_s29, %s553_s1 }
  0x2d   : > { %p357_p6 = scmp.ne.s32.totalorder %s355_s29, %s356_s30  ;;  %p362_p1 = scmp.lt.s32.totalorder %s360_s4, %s356_s30 }
  0x2f   : > { %v307_v4 = vpop.eup %306  ;;  %p358_p9 = pnand %p357_p6, %p469_p11  ;;  %p363_p3 = por %p362_p1, %p361_p0 }
  0x30   : > { %v141_v5 = vmul.f32 32.0, %v307_v4  ;;  %vm145_vm1 = vweird.f32 %v307_v4 }
  0x31   : > { %p359_p13 = pneg %p358_p9 }
  0x32   : > { %v142_v6 = vsub.f32 1.0, %v141_v5 }
  0x33   : > { %p364_p4 = pnand %p363_p3, %p359_p13 }
  0x34   : > { %v143_v7 = vmul.f32 %v307_v4, %v142_v6 }
  0x36   : > { %v144_v8 = vadd.f32 %v307_v4, %v143_v7 }
  0x38   : > { %v146_v9 = vsel %vm145_vm1, %v307_v4, %v144_v8 }
  0x9f   : > { %v139_v10 = vpop.xlane.xlu0 %138 }
  0xa0   : > { %v147_v11 = vmul.f32 %v146_v9, %v139_v10 }
  0xa2   : > { %v148_v12 = vadd.f32 1e-06, %v147_v11 }
  0xa4   : > { %308 = vrsqrt.f32 %v148_v12  ;;  %vm155_vm3 = vweird.f32 %v148_v12 }
  0xaa   : > { %v309_v13 = vpop.eup %308 }
  0xab   : > { %v150_v14 = vmul.f32 %v309_v13, %v148_v12  ;;  %vm156_vm2 = vweird.f32 %v309_v13 }
  0xac   : > { %vm157_vm4 = vmor %vm155_vm3, %vm156_vm2 }
  0xad   : > { %v151_v15 = vmul.f32 %v309_v13, %v150_v14 }
  0xaf   : > { %v152_v16 = vmul.f32 0.5, %v151_v15 }
  0xb1   : > { %v153_v17 = vsub.f32 1.5, %v152_v16 }
  0xb3   : > { %v154_v18 = vmul.f32 %v309_v13, %v153_v17 }
  0xb5   : > { %v158_v19 = vsel %vm157_vm4, %v309_v13, %v154_v18 }
  0xb6   : > { %v159_v20 = vmul.f32 %v158_v19, %v134_v0 }
  0xb8   : > { %160 = vst.msk [vmem:[%s133_s26] sm:$0xff] %vm136_vm0, %v159_v20 }
  0xb9   : > { %367 = shalt.err (!%p364_p4)
}
  0xba   : > { %261 = dma.vmem_to_hbm [thread:$0]  (%p469_p11), %s175_s27, 128, %s177_s28, %s162_s10  }
  0xbb PF: > { %s188_s13 = sand.u32 1, %s394_s6   ;;  %p559_p7 = scmp.ge.s32.totalorder %s406_s9, 2 }
  0xbc   : > { %s189_s14 = scalar_lea.sflag [#allocation4], %s188_s13 }
  0xbd   : > { %p268_p5 = pnand %p559_p7, %p473_p12 }
  0xbf   : > { %p269_p8 = pneg %p268_p5 }
  0xc1   : > { %389 = dma.done.wait (%p269_p8), %s189_s14, 128  }
  0xc2   : > { %391 = vsyncadd (%p269_p8), %s189_s14, 4294967168  ;;  %p14_p10 = scmp.ge.s32.totalorder %s444_s12, 4   ;;  %s560_s6 = smov %s398_s7 }
  0xc3   : > { %s561_s7 = smov %s402_s8  ;;  %s562_s8 = smov %s456_s15 }
  0xc4   : > { %s563_s9 = smov %s444_s12  ;;  %16 = sbr.rel (!%p14_p10) target bundleno = 5 (0x5), region = 69 }
  0xc9   :  { %195 = vsyncpa [#allocation3], 1 }
  0xca   :  { %197 = vsyncpa [#allocation3 + $0x1], 1 }
  0xcb   :  { %198 = vsyncpa [#allocation4], 1 }
  0xcc   :  { %200 = vsyncpa [#allocation4 + $0x1], 1 }

</bundles_post_ra>
